<compile_context>
chip_gen: v5e
topology: v5e:2x2
jax: 0.10.0
libtpu: 0.0.40
codegen_flags: <defaults>
</compile_context>

<pallas_src>
import functools

import jax
import jax.numpy as jnp
from jax.experimental import pallas as pl
from jax.experimental.pallas import tpu as pltpu


# Set to jnp.bfloat16 to feed the 256-wide bf16 MXU on v6e/v7x (accumulation stays
# f32 via preferred_element_type). Default f32 to match the PyTorch fp32 forward.
MM_DTYPE = jnp.float32


def _round_up(x, m):
    return ((x + m - 1) // m) * m


def _choose_row_tiling(m0, tm_max=256):
    """Pick (tm, mp): tm multiple of 8, <= tm_max, minimizing padded rows."""
    m8 = _round_up(max(m0, 8), 8)
    num = -(-m8 // tm_max)                 # ceil
    tm = _round_up(-(-m8 // num), 8)
    return tm, tm * num


# ---------------------------------------------------------------------------
# Pallas kernels
# ---------------------------------------------------------------------------

def _spectral_mix_kernel(x_ref, w1_ref, b1_ref, w2_ref, b2_ref, o_ref):
    """Two packed lane-dense GEMMs = both WeightsBlocks + concat Linears."""
    f32 = jnp.float32
    x = x_ref[...].astype(MM_DTYPE)                    # (tm, 2C) = [real | imag]
    h = jnp.dot(x, w1_ref[...], preferred_element_type=f32) + b1_ref[...]
    h = jnp.maximum(h, 0.0)                            # (tm, 4C) = [r1|r2|i1|i2]
    y = jnp.dot(h.astype(MM_DTYPE), w2_ref[...], preferred_element_type=f32) + b2_ref[...]
    o_ref[...] = y.astype(o_ref.dtype)                 # (tm, 2C) = [tr | ti]


def _add_kernel(a_ref, b_ref, o_ref):
    o_ref[...] = a_ref[...] + b_ref[...]


def _add_relu_kernel(a_ref, b_ref, o_ref):
    o_ref[...] = jnp.maximum(a_ref[...] + b_ref[...], 0.0)


# ---------------------------------------------------------------------------
# Wrappers around pallas_call
# ---------------------------------------------------------------------------

def spectral_mix(x2, pp, tm_max=256):
    """x2: (M, 2C) = [real | imag] rfft coefficients (channels last).

    Returns (M, 2C) = [tr | ti]. Weights in `pp` are pre-packed (see pack_spectral).
    """
    m0, two_c = x2.shape
    tm, mp = _choose_row_tiling(m0, tm_max)
    if mp != m0:
        x2 = jnp.pad(x2, ((0, mp - m0), (0, 0)))   # padded rows sliced off below

    four_c = pp['w1p'].shape[1]
    row_spec = pl.BlockSpec((tm, two_c), lambda i: (i, 0))

    out = pl.pallas_call(
        _spectral_mix_kernel,
        out_shape=jax.ShapeDtypeStruct((mp, two_c), jnp.float32),
        grid=(mp // tm,),
        in_specs=[row_spec,
                  pl.BlockSpec((two_c, four_c), lambda i: (0, 0)),
                  pl.BlockSpec((1, four_c), lambda i: (0, 0)),
                  pl.BlockSpec((four_c, two_c), lambda i: (0, 0)),
                  pl.BlockSpec((1, two_c), lambda i: (0, 0))],
        out_specs=row_spec,
        compiler_params=pltpu.CompilerParams(dimension_semantics=("parallel",)),
    )(x2, pp['w1p'], pp['b1p'], pp['w2p'], pp['b2p'])
    return out[:m0] if mp != m0 else out


def eltwise_add(a, b, relu=False, block_rows=512):
    """Fused residual add (+ optional ReLU) over a lane-dense (rows, 128) view."""
    shape, dtype = a.shape, a.dtype
    n = a.size
    lane = 128
    rows = _round_up(-(-n // lane), 8)
    block_rows = min(block_rows, rows)
    rows_p = _round_up(rows, block_rows)
    npad = rows_p * lane

    af = jnp.pad(a.reshape(-1), (0, npad - n)).reshape(rows_p, lane)
    bf = jnp.pad(b.reshape(-1), (0, npad - n)).reshape(rows_p, lane)

    kernel = _add_relu_kernel if relu else _add_kernel
    spec = pl.BlockSpec((block_rows, lane), lambda i: (i, 0))
    out = pl.pallas_call(
        kernel,
        out_shape=jax.ShapeDtypeStruct((rows_p, lane), dtype),
        grid=(rows_p // block_rows,),
        in_specs=[spec, spec],
        out_specs=spec,
        compiler_params=pltpu.CompilerParams(dimension_semantics=("parallel",)),
    )(af, bf)
    return out.reshape(-1)[:n].reshape(shape)


# ---------------------------------------------------------------------------
# Model pieces (glue: FFTs, tiny linears, reshapes)
# ---------------------------------------------------------------------------

def spectral_conv2d(x, pp):
    """x: (B, H, W, C) channels-last. Returns the irfft of the mixed spectrum
    (residual add is fused by the caller)."""
    B, H, W, C = x.shape
    out_ft = jnp.fft.rfft2(x, axes=(1, 2), norm='ortho')     # (B, H, Wf, C) complex
    Wf = out_ft.shape[2]
    m = B * H * Wf
    x2 = jnp.concatenate([out_ft.real.reshape(m, C),
                          out_ft.imag.reshape(m, C)], axis=-1).astype(jnp.float32)

    y2 = spectral_mix(x2, pp)                                  # (m, 2C) = [tr | ti]

    tr = y2[:, :C].reshape(B, H, Wf, C)
    ti = y2[:, C:].reshape(B, H, Wf, C)
    x_out = jnp.fft.irfft2(jax.lax.complex(tr, ti), s=(H, W),
                           axes=(1, 2), norm='ortho').astype(jnp.float32)
    return x_out


def df_no_forward(params, t, x0):
    """t: scalar, x0: (b, d, c, H, W) -> (b, 1, d*c, H, W)."""
    b, d, c, H, W = x0.shape
    out = x0.reshape(b, d * c, H, W).astype(jnp.float32)       # 'b d c x y -> b (d c) x y'
    t_img = jnp.full((b, 1, H, W), t, jnp.float32)
    out = jnp.concatenate([out, t_img], axis=1)                # (b, dc+1, H, W)
    out = jnp.transpose(out, (0, 2, 3, 1))                     # channels-last from here on

    # initial Linear: K = dc+1 = 5 lanes -> intentionally left to XLA.
    out = out @ params['initial_w'] + params['initial_b']      # (b, H, W, nhidden)

    h = spectral_conv2d(out, params['fc1'])
    out = eltwise_add(h, out, relu=True)                       # residual + ReLU fused
    h = spectral_conv2d(out, params['fc2'])
    out = eltwise_add(h, out, relu=True)
    h = spectral_conv2d(out, params['fc3'])
    out = eltwise_add(h, out, relu=False)                      # residual only

    # final Linear: N = dc = 4 lanes -> left to XLA.
    out = out @ params['final_w'] + params['final_b']          # (b, H, W, dc)
    out = jnp.transpose(out, (0, 3, 1, 2))                     # (b, dc, H, W)
    return out[:, None]                                        # 'b c x y -> b 1 c x y'


# ---------------------------------------------------------------------------
# Parameter init (PyTorch-shaped) + one-time packing for the Pallas kernel
# ---------------------------------------------------------------------------

def init_params(key, in_dim, nhidden):
    def lin(k, fan_in, fan_out):
        k1, k2 = jax.random.split(k)
        bound = 1.0 / float(fan_in) ** 0.5
        w = jax.random.uniform(k1, (fan_in, fan_out), jnp.float32, -bound, bound)
        b = jax.random.uniform(k2, (1, fan_out), jnp.float32, -bound, bound)
        return w, b

    def spectral(k, cc):
        ks = jax.random.split(k, 6)
        scale = 1.0 / cc
        p = {
            'w1': scale * jax.random.uniform(ks[0], (2, cc, cc), jnp.float32),
            'b1': scale * jax.random.uniform(ks[1], (2, cc), jnp.float32),
            'w2': scale * jax.random.uniform(ks[2], (2, cc, cc), jnp.float32),
            'b2': scale * jax.random.uniform(ks[3], (2, cc), jnp.float32),
        }
        p['crw'], p['crb'] = lin(ks[4], 2 * cc, cc)
        p['ciw'], p['cib'] = lin(ks[5], 2 * cc, cc)
        return p

    keys = jax.random.split(key, 5)
    params = {}
    params['initial_w'], params['initial_b'] = lin(keys[0], in_dim + 1, nhidden)
    params['final_w'], params['final_b'] = lin(keys[1], nhidden, in_dim)
    params['fc1'] = spectral(keys[2], nhidden)
    params['fc2'] = spectral(keys[3], nhidden)
    params['fc3'] = spectral(keys[4], nhidden)
    return params


def pack_spectral(p):
    """Pack WeightsBlock{1,2} + concat Linears into two lane-dense GEMM operands.

    Stage 1:  [real|imag] @ W1p + b1p -> relu -> [r1|r2|i1|i2]
    Stage 2:  [r1|r2|i1|i2] @ W2p + b2p      -> [tr|ti]
    """
    w10, w11 = p['w1'][0], p['w1'][1]
    w20, w21 = p['w2'][0], p['w2'][1]
    C = w10.shape[0]
    # rows 0:C act on `real`, rows C:2C act on `imag`
    top = jnp.concatenate([w10, w20, w11, w21], axis=1)          # (C, 4C)
    bot = jnp.concatenate([-w11, -w21, w10, w20], axis=1)        # (C, 4C)
    w1p = jnp.concatenate([top, bot], axis=0)                    # (2C, 4C)
    b1p = jnp.concatenate([p['b1'][0], p['b2'][0],
                           p['b1'][1], p['b2'][1]])[None, :]     # (1, 4C)

    zeros = jnp.zeros((2 * C, C), jnp.float32)
    w2p = jnp.concatenate([
        jnp.concatenate([p['crw'], zeros], axis=1),              # rows [r1;r2] -> tr
        jnp.concatenate([zeros, p['ciw']], axis=1),              # rows [i1;i2] -> ti
    ], axis=0)                                                   # (4C, 2C)
    b2p = jnp.concatenate([p['crb'][0], p['cib'][0]])[None, :]   # (1, 2C)

    return {'w1p': w1p.astype(MM_DTYPE), 'b1p': b1p.astype(jnp.float32),
            'w2p': w2p.astype(MM_DTYPE), 'b2p': b2p.astype(jnp.float32)}


def prepare_params(raw):
    return {
        'initial_w': raw['initial_w'], 'initial_b': raw['initial_b'],
        'final_w': raw['final_w'], 'final_b': raw['final_b'],
        'fc1': pack_spectral(raw['fc1']),
        'fc2': pack_spectral(raw['fc2']),
        'fc3': pack_spectral(raw['fc3']),
    }


# ---------------------------------------------------------------------------
# Pure-JAX reference (mirrors the PyTorch forward 1:1) for a correctness check
# ---------------------------------------------------------------------------

def _reference_forward(raw, t, x0):
    b, d, c, H, W = x0.shape
    out = x0.reshape(b, d * c, H, W).astype(jnp.float32)
    t_img = jnp.full((b, 1, H, W), t, jnp.float32)
    out = jnp.concatenate([out, t_img], axis=1)
    out = jnp.transpose(out, (0, 2, 3, 1)) @ raw['initial_w'] + raw['initial_b']
    out = jnp.transpose(out, (0, 3, 1, 2))                       # NCHW

    def spectral_ref(x, p):
        bias = x
        ft = jnp.fft.rfft2(x, norm='ortho')
        re = jnp.transpose(ft.real, (0, 2, 3, 1))
        im = jnp.transpose(ft.imag, (0, 2, 3, 1))

        def wblock(w, bb):
            r = jax.nn.relu(re @ w[0] - im @ w[1] + bb[0])
            i = jax.nn.relu(im @ w[0] + re @ w[1] + bb[1])
            return r, i

        r1, i1 = wblock(p['w1'], p['b1'])
        r2, i2 = wblock(p['w2'], p['b2'])
        tr = jnp.concatenate([r1, r2], axis=-1) @ p['crw'] + p['crb']
        ti = jnp.concatenate([i1, i2], axis=-1) @ p['ciw'] + p['cib']
        tr = jnp.transpose(tr, (0, 3, 1, 2))
        ti = jnp.transpose(ti, (0, 3, 1, 2))
        xo = jnp.fft.irfft2(jax.lax.complex(tr, ti),
                            s=(x.shape[-2], x.shape[-1]), norm='ortho')
        return xo + bias

    out = jax.nn.relu(spectral_ref(out, raw['fc1']))
    out = jax.nn.relu(spectral_ref(out, raw['fc2']))
    out = spectral_ref(out, raw['fc3'])
    out = jnp.transpose(out, (0, 2, 3, 1)) @ raw['final_w'] + raw['final_b']
    out = jnp.transpose(out, (0, 3, 1, 2))
    return out[:, None]


# ---------------------------------------------------------------------------
# Main
# ---------------------------------------------------------------------------

if __name__ == "__main__":
    key = jax.random.PRNGKey(0)
    k_p, k_x = jax.random.split(key)

    B, D, C, H, W = 2, 1, 4, 16, 16     # in_channels = d*c = 4
    NHIDDEN = 32

    raw_params = init_params(k_p, in_dim=D * C, nhidden=NHIDDEN)
    params = prepare_params(raw_params)

    x0 = jax.random.normal(k_x, (B, D, C, H, W), jnp.float32)
    t = jnp.float32(0.5)

    fwd = jax.jit(functools.partial(df_no_forward, params))
    out = jax.block_until_ready(fwd(t, x0))

    assert out.shape == (B, 1, D * C, H, W), out.shape
    assert jnp.all(jnp.isfinite(out))

    # Correctness check against the unpacked pure-JAX reference of the PyTorch forward.
    ref = jax.block_until_ready(jax.jit(functools.partial(_reference_forward, raw_params))(t, x0))
    assert jnp.allclose(out, ref, rtol=2e-3, atol=2e-3), float(jnp.max(jnp.abs(out - ref)))

    print("KERNEL_OK")
</pallas_src>

<mosaic_0001>
module attributes {stable_mosaic.version = 11 : i64} {
  func.func @_spectral_mix_kernel(%arg0: i32, %arg1: memref<144x64xf32, #tpu.memory_space<vmem>>, %arg2: memref<64x128xf32, #tpu.memory_space<vmem>>, %arg3: memref<1x128xf32, #tpu.memory_space<vmem>>, %arg4: memref<128x64xf32, #tpu.memory_space<vmem>>, %arg5: memref<1x64xf32, #tpu.memory_space<vmem>>, %arg6: memref<144x64xf32, #tpu.memory_space<vmem>>) attributes {dimension_semantics = [#tpu.dimension_semantics<parallel>], iteration_bounds = array<i64: 2>, scalar_prefetch = 0 : i64, scratch_operands = 0 : i64, tpu.core_type = #tpu.core_type<tc>, window_params = [{transform_indices = @transform_0, window_bounds = array<i64: 144, 64>}, {pipeline_mode = #tpu.pipeline_mode<synchronous>, transform_indices = @transform_1, window_bounds = array<i64: 64, 128>}, {pipeline_mode = #tpu.pipeline_mode<synchronous>, transform_indices = @transform_2, window_bounds = array<i64: 1, 128>}, {pipeline_mode = #tpu.pipeline_mode<synchronous>, transform_indices = @transform_3, window_bounds = array<i64: 128, 64>}, {pipeline_mode = #tpu.pipeline_mode<synchronous>, transform_indices = @transform_4, window_bounds = array<i64: 1, 64>}, {transform_indices = @transform_5, window_bounds = array<i64: 144, 64>}]} {
    %c0 = arith.constant 0 : index
    %c0_0 = arith.constant 0 : index
    %0 = vector.load %arg1[%c0, %c0_0] : memref<144x64xf32, #tpu.memory_space<vmem>>, vector<144x64xf32>
    %c0_1 = arith.constant 0 : index
    %c0_2 = arith.constant 0 : index
    %1 = vector.load %arg2[%c0_1, %c0_2] : memref<64x128xf32, #tpu.memory_space<vmem>>, vector<64x128xf32>
    %cst = arith.constant dense<0.000000e+00> : vector<144x128xf32>
    %2 = tpu.matmul %0, %1, %cst {dimension_numbers = #tpu.dot_dimension_numbers<[1], [0], [0], [1], [0, 0, 1, 1], [], []>} : vector<144x64xf32>, vector<64x128xf32>, vector<144x128xf32> -> vector<144x128xf32>
    %c0_3 = arith.constant 0 : index
    %c0_4 = arith.constant 0 : index
    %3 = vector.load %arg3[%c0_3, %c0_4] : memref<1x128xf32, #tpu.memory_space<vmem>>, vector<1x128xf32>
    %4 = vector.broadcast %3 : vector<1x128xf32> to vector<144x128xf32>
    %5 = arith.addf %2, %4 : vector<144x128xf32>
    %cst_5 = arith.constant 0.000000e+00 : f32
    %6 = vector.broadcast %cst_5 : f32 to vector<144x128xf32>
    %7 = arith.maximumf %5, %6 : vector<144x128xf32>
    %c0_6 = arith.constant 0 : index
    %c0_7 = arith.constant 0 : index
    %8 = vector.load %arg4[%c0_6, %c0_7] : memref<128x64xf32, #tpu.memory_space<vmem>>, vector<128x64xf32>
    %cst_8 = arith.constant dense<0.000000e+00> : vector<144x64xf32>
    %9 = tpu.matmul %7, %8, %cst_8 {dimension_numbers = #tpu.dot_dimension_numbers<[1], [0], [0], [1], [0, 0, 1, 1], [], []>} : vector<144x128xf32>, vector<128x64xf32>, vector<144x64xf32> -> vector<144x64xf32>
    %c0_9 = arith.constant 0 : index
    %c0_10 = arith.constant 0 : index
    %10 = vector.load %arg5[%c0_9, %c0_10] : memref<1x64xf32, #tpu.memory_space<vmem>>, vector<1x64xf32>
    %11 = vector.broadcast %10 : vector<1x64xf32> to vector<144x64xf32>
    %12 = arith.addf %9, %11 : vector<144x64xf32>
    %c0_11 = arith.constant 0 : index
    %c0_12 = arith.constant 0 : index
    %13 = vector.load %arg6[%c0_11, %c0_12] : memref<144x64xf32, #tpu.memory_space<vmem>>, vector<144x64xf32>
    tpu.vector_store %arg6[%c0_11, %c0_12], %12 {strides = array<i32>} : memref<144x64xf32, #tpu.memory_space<vmem>>, vector<144x64xf32>,
    return
  }
  func.func @transform_0(%arg0: i32) -> (i32, i32) {
    %c0_i32 = arith.constant 0 : i32
    %c0_i32_0 = arith.constant 0 : i32
    return %arg0, %c0_i32 : i32, i32
  }
  func.func @transform_1(%arg0: i32) -> (i32, i32) {
    %c0_i32 = arith.constant 0 : i32
    %c0_i32_0 = arith.constant 0 : i32
    %c0_i32_1 = arith.constant 0 : i32
    return %c0_i32, %c0_i32_0 : i32, i32
  }
  func.func @transform_2(%arg0: i32) -> (i32, i32) {
    %c0_i32 = arith.constant 0 : i32
    %c0_i32_0 = arith.constant 0 : i32
    %c0_i32_1 = arith.constant 0 : i32
    return %c0_i32, %c0_i32_0 : i32, i32
  }
  func.func @transform_3(%arg0: i32) -> (i32, i32) {
    %c0_i32 = arith.constant 0 : i32
    %c0_i32_0 = arith.constant 0 : i32
    %c0_i32_1 = arith.constant 0 : i32
    return %c0_i32, %c0_i32_0 : i32, i32
  }
  func.func @transform_4(%arg0: i32) -> (i32, i32) {
    %c0_i32 = arith.constant 0 : i32
    %c0_i32_0 = arith.constant 0 : i32
    %c0_i32_1 = arith.constant 0 : i32
    return %c0_i32, %c0_i32_0 : i32, i32
  }
  func.func @transform_5(%arg0: i32) -> (i32, i32) {
    %c0_i32 = arith.constant 0 : i32
    %c0_i32_0 = arith.constant 0 : i32
    return %arg0, %c0_i32 : i32, i32
  }
}

module attributes {stable_mosaic.version = 11 : i64} {
  func.func @_add_relu_kernel(%arg0: i32, %arg1: memref<128x128xf32, #tpu.memory_space<vmem>>, %arg2: memref<128x128xf32, #tpu.memory_space<vmem>>, %arg3: memref<128x128xf32, #tpu.memory_space<vmem>>) attributes {dimension_semantics = [#tpu.dimension_semantics<parallel>], iteration_bounds = array<i64: 1>, scalar_prefetch = 0 : i64, scratch_operands = 0 : i64, tpu.core_type = #tpu.core_type<tc>, window_params = [{transform_indices = @transform_0, window_bounds = array<i64: 128, 128>}, {transform_indices = @transform_1, window_bounds = array<i64: 128, 128>}, {transform_indices = @transform_2, window_bounds = array<i64: 128, 128>}]} {
    %c0 = arith.constant 0 : index
    %c0_0 = arith.constant 0 : index
    %0 = vector.load %arg1[%c0, %c0_0] : memref<128x128xf32, #tpu.memory_space<vmem>>, vector<128x128xf32>
    %c0_1 = arith.constant 0 : index
    %c0_2 = arith.constant 0 : index
    %1 = vector.load %arg2[%c0_1, %c0_2] : memref<128x128xf32, #tpu.memory_space<vmem>>, vector<128x128xf32>
    %2 = arith.addf %0, %1 : vector<128x128xf32>
    %cst = arith.constant 0.000000e+00 : f32
    %3 = vector.broadcast %cst : f32 to vector<128x128xf32>
    %4 = arith.maximumf %2, %3 : vector<128x128xf32>
    %c0_3 = arith.constant 0 : index
    %c0_4 = arith.constant 0 : index
    %5 = vector.load %arg3[%c0_3, %c0_4] : memref<128x128xf32, #tpu.memory_space<vmem>>, vector<128x128xf32>
    tpu.vector_store %arg3[%c0_3, %c0_4], %4 {strides = array<i32>} : memref<128x128xf32, #tpu.memory_space<vmem>>, vector<128x128xf32>,
    return
  }
  func.func @transform_0(%arg0: i32) -> (i32, i32) {
    %c0_i32 = arith.constant 0 : i32
    %c0_i32_0 = arith.constant 0 : i32
    return %arg0, %c0_i32 : i32, i32
  }
  func.func @transform_1(%arg0: i32) -> (i32, i32) {
    %c0_i32 = arith.constant 0 : i32
    %c0_i32_0 = arith.constant 0 : i32
    return %arg0, %c0_i32 : i32, i32
  }
  func.func @transform_2(%arg0: i32) -> (i32, i32) {
    %c0_i32 = arith.constant 0 : i32
    %c0_i32_0 = arith.constant 0 : i32
    return %arg0, %c0_i32 : i32, i32
  }
}

module attributes {stable_mosaic.version = 11 : i64} {
  func.func @_add_kernel(%arg0: i32, %arg1: memref<128x128xf32, #tpu.memory_space<vmem>>, %arg2: memref<128x128xf32, #tpu.memory_space<vmem>>, %arg3: memref<128x128xf32, #tpu.memory_space<vmem>>) attributes {dimension_semantics = [#tpu.dimension_semantics<parallel>], iteration_bounds = array<i64: 1>, scalar_prefetch = 0 : i64, scratch_operands = 0 : i64, tpu.core_type = #tpu.core_type<tc>, window_params = [{transform_indices = @transform_0, window_bounds = array<i64: 128, 128>}, {transform_indices = @transform_1, window_bounds = array<i64: 128, 128>}, {transform_indices = @transform_2, window_bounds = array<i64: 128, 128>}]} {
    %c0 = arith.constant 0 : index
    %c0_0 = arith.constant 0 : index
    %0 = vector.load %arg1[%c0, %c0_0] : memref<128x128xf32, #tpu.memory_space<vmem>>, vector<128x128xf32>
    %c0_1 = arith.constant 0 : index
    %c0_2 = arith.constant 0 : index
    %1 = vector.load %arg2[%c0_1, %c0_2] : memref<128x128xf32, #tpu.memory_space<vmem>>, vector<128x128xf32>
    %2 = arith.addf %0, %1 : vector<128x128xf32>
    %c0_3 = arith.constant 0 : index
    %c0_4 = arith.constant 0 : index
    %3 = vector.load %arg3[%c0_3, %c0_4] : memref<128x128xf32, #tpu.memory_space<vmem>>, vector<128x128xf32>
    tpu.vector_store %arg3[%c0_3, %c0_4], %2 {strides = array<i32>} : memref<128x128xf32, #tpu.memory_space<vmem>>, vector<128x128xf32>,
    return
  }
  func.func @transform_0(%arg0: i32) -> (i32, i32) {
    %c0_i32 = arith.constant 0 : i32
    %c0_i32_0 = arith.constant 0 : i32
    return %arg0, %c0_i32 : i32, i32
  }
  func.func @transform_1(%arg0: i32) -> (i32, i32) {
    %c0_i32 = arith.constant 0 : i32
    %c0_i32_0 = arith.constant 0 : i32
    return %arg0, %c0_i32 : i32, i32
  }
  func.func @transform_2(%arg0: i32) -> (i32, i32) {
    %c0_i32 = arith.constant 0 : i32
    %c0_i32_0 = arith.constant 0 : i32
    return %arg0, %c0_i32 : i32, i32
  }
}

</mosaic_0001>

<bundles_post_ra>
// kernel: df_no_forward.6
= control target key start
LH: loop header
LB: loop body
LE: loop exit
PB: predicated region body
PF: predicated region fallthrough
CT: control target
= control target key end

     0   :  { %s682_s18 = smov 0   ;;  %s880_s0 = inlined_call_operand.vmem [shape: f32[288,64], index: 0, kind: input, shape index: {}]   ;;  %s881_s1 = inlined_call_operand.vmem [shape: f32[64,128], index: 1, kind: input, shape index: {}]   ;;  %s882_s2 = inlined_call_operand.vmem [shape: f32[1,128], index: 2, kind: input, shape index: {}]   ;;  %s883_s3 = inlined_call_operand.vmem [shape: f32[128,64], index: 3, kind: input, shape index: {}]   ;;  %s884_s4 = inlined_call_operand.vmem [shape: f32[1,64], index: 4, kind: input, shape index: {}]   ;;  %s885_s5 = inlined_call_operand.vmem [shape: f32[288,64], index: 5, kind: output, shape index: {}]  }
   0x1 LB: > { %s567_s19 = sadd.s32 4294967295, %s650_s18   ;;  %p571_p0 = scmp.ge.s32.totalorder %s650_s18, 1  ;;  %s650_s18 = sphi %s682_s18, %s15_s18  }
   0x2   : > { %p188_p1 = scmp.lt.s32.totalorder %s650_s18, 3 }
   0x4   : > { %p189_p2 = pnand %p571_p0, %p188_p1 }
   0x5   : > { %s216_s24 = smul.u32 (!%p189_p2), 18, %s567_s19 }
   0x6   : > { %192 = sbr.rel (%p189_p2) target bundleno = 412 (0x19c), region = 40 }
   0x7   : > { %p217_p3 = scmp.lt.s32.totalorder (!%p189_p2), %s216_s24, 35 }
   0xb   : > { %v253_v0 = vld [vmem:[%s881_s1 + $0x38] sm:$0xff]  ;;  %v252_v1 = vld [vmem:[%s881_s1 + $0x30] sm:$0xff]  ;;  %v251_v2 = vld [vmem:[%s881_s1 + $0x28] sm:$0xff]  ;;  %s887_s24 = smov (!%p217_p3, %s216_s24), 35  ;;  %vm258_vm0 = vcmask 523264  }
   0xc   : > { %321 = vmatpush.msra.mxu0 %v253_v0  ;;  %594 = vmatpush.msra.mxu3 %v253_v0  ;;  %v250_v3 = vld [vmem:[%s881_s1 + $0x20] sm:$0xff]  ;;  %v249_v4 = vld [vmem:[%s881_s1 + $0x18] sm:$0xff]  ;;  %s572_s6 = sshll.u32 %s887_s24, 3  ;;  %v248_v5 = vld [vmem:[%s881_s1 + $0x10] sm:$0xff] }
   0xd   : > { %v247_v6 = vld [vmem:[%s881_s1 + $0x8] sm:$0xff]  ;;  %s719_s13 = scalar_lea.vmem %s880_s0, %s572_s6  ;;  %v246_v7 = vld [vmem:[%s881_s1] sm:$0xff]  ;;  %v417_v17 = vld [vmem:[%s883_s3 + $0x78] sm:$0xff]  ;;  %s839_s10 = scalar_lea.vmem %s885_s5, %s572_s6 }
   0xe   : > { %322 = vmatpush.msra.mxu0 %v252_v1  ;;  %595 = vmatpush.msra.mxu3 %v252_v1  ;;  %v228_v8 = vld [vmem:[%s719_s13] sm:$0xff]  ;;  %v229_v9 = vld [vmem:[%s719_s13 + $0x8] sm:$0xff]  ;;  %v230_v10 = vld [vmem:[%s719_s13 + $0x10] sm:$0xff] }
   0xf   : > { %v231_v11 = vld [vmem:[%s719_s13 + $0x18] sm:$0xff]  ;;  %v238_v12 = vld [vmem:[%s719_s13 + $0x50] sm:$0xff]  ;;  %v232_v13 = vld [vmem:[%s719_s13 + $0x20] sm:$0xff]  ;;  %422 = vmatpush.msra.mxu1 %v417_v17  ;;  %602 = vmatpush.msra.mxu2 %v417_v17 }
  0x10   : > { %323 = vmatpush.msra.mxu0 %v251_v2  ;;  %596 = vmatpush.msra.mxu3 %v251_v2  ;;  %v239_v14 = vld [vmem:[%s719_s13 + $0x58] sm:$0xff]  ;;  %v233_v15 = vld [vmem:[%s719_s13 + $0x28] sm:$0xff]  ;;  %v240_v16 = vld [vmem:[%s719_s13 + $0x60] sm:$0xff] }
  0x11   : > { %v416_v18 = vld [vmem:[%s883_s3 + $0x70] sm:$0xff]  ;;  %v415_v19 = vld [vmem:[%s883_s3 + $0x68] sm:$0xff]  ;;  %v414_v21 = vld [vmem:[%s883_s3 + $0x60] sm:$0xff] }
  0x12   : > { %324 = vmatpush.msra.mxu0 %v250_v3  ;;  %597 = vmatpush.msra.mxu3 %v250_v3  ;;  %v234_v20 = vld [vmem:[%s719_s13 + $0x30] sm:$0xff]  ;;  %v241_v22 = vld [vmem:[%s719_s13 + $0x68] sm:$0xff]  ;;  %v413_v23 = vld [vmem:[%s883_s3 + $0x58] sm:$0xff] }
  0x13   : > { %423 = vmatpush.msra.mxu1 %v416_v18  ;;  %604 = vmatpush.msra.mxu2 %v416_v18  ;;  %v412_v24 = vld [vmem:[%s883_s3 + $0x50] sm:$0xff]  ;;  %v411_v25 = vld [vmem:[%s883_s3 + $0x48] sm:$0xff]  ;;  %v235_v26 = vld [vmem:[%s719_s13 + $0x38] sm:$0xff] }
  0x14   : > { %325 = vmatpush.msra.mxu0 %v249_v4  ;;  %598 = vmatpush.msra.mxu3 %v249_v4  ;;  %v410_v27 = vld [vmem:[%s883_s3 + $0x40] sm:$0xff]  ;;  %v242_v28 = vld [vmem:[%s719_s13 + $0x70] sm:$0xff]  ;;  %v409_v29 = vld [vmem:[%s883_s3 + $0x38] sm:$0xff] }
  0x15   : > { %424 = vmatpush.msra.mxu1 %v415_v19  ;;  %606 = vmatpush.msra.mxu2 %v415_v19  ;;  %v408_v30 = vld [vmem:[%s883_s3 + $0x30] sm:$0xff]  ;;  %v407_v31 = vld [vmem:[%s883_s3 + $0x28] sm:$0xff]  ;;  %v236_v32 = vld [vmem:[%s719_s13 + $0x40] sm:$0xff] }
  0x16   : > { %326 = vmatpush.msra.mxu0 %v248_v5  ;;  %599 = vmatpush.msra.mxu3 %v248_v5  ;;  %v406_v33 = vld [vmem:[%s883_s3 + $0x20] sm:$0xff]  ;;  %v243_v34 = vld [vmem:[%s719_s13 + $0x78] sm:$0xff]  ;;  %v237_v36 = vld [vmem:[%s719_s13 + $0x48] sm:$0xff] }
  0x17   : > { %425 = vmatpush.msra.mxu1 %v414_v21  ;;  %608 = vmatpush.msra.mxu2 %v414_v21  ;;  %v405_v35 = vld [vmem:[%s883_s3 + $0x18] sm:$0xff]  ;;  %v244_v37 = vld [vmem:[%s719_s13 + $0x80] sm:$0xff]  ;;  %v245_v38 = vld [vmem:[%s719_s13 + $0x88] sm:$0xff] }
  0x18   : > { %327 = vmatpush.msra.mxu0 %v247_v6  ;;  %600 = vmatpush.msra.mxu3 %v247_v6  ;;  %v404_v39 = vld [vmem:[%s883_s3 + $0x10] sm:$0xff]  ;;  %v403_v40 = vld [vmem:[%s883_s3 + $0x8] sm:$0xff]  ;;  %v402_v41 = vld [vmem:[%s883_s3] sm:$0xff] }
  0x19   : > { %426 = vmatpush.msra.mxu1 %v413_v23  ;;  %610 = vmatpush.msra.mxu2 %v413_v23  ;;  %v811_v42 = vld [vmem:[%s882_s2] ss:$0 sm:$0xff] }
  0x1a   : > { %328 = vmatpush.msra.mxu0 %v246_v7  ;;  %601 = vmatpush.msra.mxu3 %v246_v7 }
  0x1b   : > { %574 = vmatmul.msk.f32.vlgmr.msra.gmra.mxu0 %vm258_vm0, %v228_v8  ;;  %584 = vmatmul.msk.f32.vlgmr.msra.gmra.mxu3 %vm258_vm0, %v238_v12 }
  0x1c   : > { %603 = vmatpush.msrb.mxu3 %v417_v17  ;;  %427 = vmatpush.msra.mxu1 %v412_v24 }
  0x1d   : > { %612 = vmatpush.msra.mxu2 %v412_v24 }
  0x1e   : > { %605 = vmatpush.msrb.mxu3 %v416_v18  ;;  %428 = vmatpush.msra.mxu1 %v411_v25 }
  0x1f   : > { %614 = vmatpush.msra.mxu2 %v411_v25 }
  0x20   : > { %607 = vmatpush.msrb.mxu3 %v415_v19  ;;  %429 = vmatpush.msra.mxu1 %v410_v27 }
  0x21   : > { %616 = vmatpush.msra.mxu2 %v410_v27 }
  0x22   : > { %609 = vmatpush.msrb.mxu3 %v414_v21  ;;  %430 = vmatpush.msra.mxu1 %v409_v29 }
  0x23   : > { %575 = vmatmul.msk.f32.gmra.mxu0 %vm258_vm0, %v229_v9  ;;  %585 = vmatmul.msk.f32.gmra.mxu3 %vm258_vm0, %v239_v14 }
  0x24   : > { %611 = vmatpush.msrb.mxu3 %v413_v23  ;;  %618 = vmatpush.msra.mxu2 %v409_v29 }
  0x25   : > { %431 = vmatpush.msra.mxu1 %v408_v30 }
  0x26   : > { %613 = vmatpush.msrb.mxu3 %v412_v24  ;;  %620 = vmatpush.msra.mxu2 %v408_v30 }
  0x27   : > { %432 = vmatpush.msra.mxu1 %v407_v31 }
  0x28   : > { %615 = vmatpush.msrb.mxu3 %v411_v25  ;;  %622 = vmatpush.msra.mxu2 %v407_v31 }
  0x29   : > { %433 = vmatpush.msra.mxu1 %v406_v33 }
  0x2a   : > { %617 = vmatpush.msrb.mxu3 %v410_v27  ;;  %624 = vmatpush.msra.mxu2 %v406_v33 }
  0x2b   : > { %576 = vmatmul.msk.f32.gmra.mxu0 %vm258_vm0, %v230_v10  ;;  %586 = vmatmul.msk.f32.gmra.mxu3 %vm258_vm0, %v240_v16 }
  0x2c   : > { %619 = vmatpush.msrb.mxu3 %v409_v29  ;;  %434 = vmatpush.msra.mxu1 %v405_v35 }
  0x2d   : > { %626 = vmatpush.msra.mxu2 %v405_v35 }
  0x2e   : > { %621 = vmatpush.msrb.mxu3 %v408_v30  ;;  %435 = vmatpush.msra.mxu1 %v404_v39 }
  0x2f   : > { %628 = vmatpush.msra.mxu2 %v404_v39 }
  0x30   : > { %623 = vmatpush.msrb.mxu3 %v407_v31  ;;  %436 = vmatpush.msra.mxu1 %v403_v40 }
  0x31   : > { %630 = vmatpush.msra.mxu2 %v403_v40 }
  0x32   : > { %625 = vmatpush.msrb.mxu3 %v406_v33  ;;  %437 = vmatpush.msra.mxu1 %v402_v41  ;;  %v643_v33 = vld [vmem:[%s884_s4] ss:$0 sm:$0xff] }
  0x33   : > { %577 = vmatmul.msk.f32.gmra.mxu0 %vm258_vm0, %v231_v11  ;;  %587 = vmatmul.msk.f32.gmra.mxu3 %vm258_vm0, %v241_v22 }
  0x34   : > { %627 = vmatpush.msrb.mxu3 %v405_v35  ;;  %632 = vmatpush.msra.mxu2 %v402_v41 }
  0x36   : > { %629 = vmatpush.msrb.mxu3 %v404_v39 }
  0x38   : > { %631 = vmatpush.msrb.mxu3 %v403_v40 }
  0x3a   : > { %633 = vmatpush.msrb.mxu3 %v402_v41 }
  0x3b   : > { %578 = vmatmul.msk.f32.gmra.mxu0 %vm258_vm0, %v232_v13  ;;  %588 = vmatmul.msk.f32.gmra.mxu3 %vm258_vm0, %v242_v28 }
  0x43   : > { %579 = vmatmul.msk.f32.gmra.mxu0 %vm258_vm0, %v233_v15  ;;  %589 = vmatmul.msk.f32.gmra.mxu3 %vm258_vm0, %v243_v34 }
  0x4b   : > { %580 = vmatmul.msk.f32.gmra.mxu0 %vm258_vm0, %v234_v20  ;;  %590 = vmatmul.msk.f32.gmra.mxu3 %vm258_vm0, %v244_v37 }
  0x53   : > { %581 = vmatmul.msk.f32.gmra.mxu0 %vm258_vm0, %v235_v26  ;;  %591 = vmatmul.msk.f32.gmra.mxu3 %vm258_vm0, %v245_v38 }
  0x5b   : > { %582 = vmatmul.msk.f32.gmra.mxu0 %vm258_vm0, %v236_v32 }
  0x63   : > { %583 = vmatmul.msk.f32.gmra.mxu0 %vm258_vm0, %v237_v36 }
  0x98   : > { %v330_v43 = vpop.f32.mrf.mxu0 }
  0x99   : > { %v331_v44 = vadd.f32 %v811_v42, %v330_v43 }
  0x9b   : > { %v384_v45 = vmax.f32 %v331_v44, 0.0 }
  0x9d   : > { %438 = vmatmul.f32.vlgmr.msra.gmra.mxu1 %v384_v45 }
  0x9e   : > { %v360_v56 = vpop.f32.mrf.mxu3 }
  0x9f   : > { %v361_v15 = vadd.f32 %v811_v42, %v360_v56 }
  0xa0   : > { %v333_v46 = vpop.f32.mrf.mxu0 }
  0xa1   : > { %v334_v47 = vadd.f32 %v811_v42, %v333_v46  ;;  %v394_v18 = vmax.f32 %v361_v15, 0.0 }
  0xa3   : > { %v385_v48 = vmax.f32 %v334_v47, 0.0 }
  0xa5   : > { %441 = vmatmul.f32.gmra.mxu1 %v385_v48 }
  0xa6   : > { %v363_v60 = vpop.f32.mrf.mxu3 }
  0xa7   : > { %v364_v20 = vadd.f32 %v811_v42, %v363_v60 }
  0xa8   : > { %v336_v49 = vpop.f32.mrf.mxu0 }
  0xa9   : > { %v337_v50 = vadd.f32 %v811_v42, %v336_v49  ;;  %v395_v23 = vmax.f32 %v364_v20, 0.0 }
  0xab   : > { %v386_v51 = vmax.f32 %v337_v50, 0.0 }
  0xad   : > { %444 = vmatmul.f32.gmra.mxu1 %v386_v51 }
  0xae   : > { %v366_v0 = vpop.f32.mrf.mxu3 }
  0xaf   : > { %v367_v25 = vadd.f32 %v811_v42, %v366_v0 }
  0xb0   : > { %v339_v52 = vpop.f32.mrf.mxu0 }
  0xb1   : > { %v340_v53 = vadd.f32 %v811_v42, %v339_v52  ;;  %v396_v26 = vmax.f32 %v367_v25, 0.0 }
  0xb3   : > { %v387_v54 = vmax.f32 %v340_v53, 0.0 }
  0xb5   : > { %447 = vmatmul.f32.gmra.mxu1 %v387_v54 }
  0xb6   : > { %v369_v4 = vpop.f32.mrf.mxu3 }
  0xb7   : > { %v370_v27 = vadd.f32 %v811_v42, %v369_v4 }
  0xb8   : > { %v342_v55 = vpop.f32.mrf.mxu0 }
  0xb9   : > { %v343_v57 = vadd.f32 %v811_v42, %v342_v55  ;;  %v397_v28 = vmax.f32 %v370_v27, 0.0 }
  0xbb   : > { %v388_v58 = vmax.f32 %v343_v57, 0.0 }
  0xbd   : > { %450 = vmatmul.f32.gmra.mxu1 %v388_v58 }
  0xbe   : > { %v372_v8 = vpop.f32.mrf.mxu3 }
  0xbf   : > { %v373_v29 = vadd.f32 %v811_v42, %v372_v8 }
  0xc0   : > { %v345_v59 = vpop.f32.mrf.mxu0 }
  0xc1   : > { %v346_v61 = vadd.f32 %v811_v42, %v345_v59  ;;  %v398_v30 = vmax.f32 %v373_v29, 0.0 }
  0xc3   : > { %v389_v62 = vmax.f32 %v346_v61, 0.0 }
  0xc5   : > { %453 = vmatmul.f32.gmra.mxu1 %v389_v62 }
  0xc6   : > { %v375_v12 = vpop.f32.mrf.mxu3 }
  0xc7   : > { %v376_v31 = vadd.f32 %v811_v42, %v375_v12 }
  0xc8   : > { %v348_v63 = vpop.f32.mrf.mxu0 }
  0xc9   : > { %v349_v1 = vadd.f32 %v811_v42, %v348_v63  ;;  %v399_v32 = vmax.f32 %v376_v31, 0.0 }
  0xcb   : > { %v390_v2 = vmax.f32 %v349_v1, 0.0 }
  0xcd   : > { %456 = vmatmul.f32.gmra.mxu1 %v390_v2 }
  0xce   : > { %v378_v16 = vpop.f32.mrf.mxu3 }
  0xcf   : > { %v379_v17 = vadd.f32 %v811_v42, %v378_v16 }
  0xd0   : > { %v351_v3 = vpop.f32.mrf.mxu0 }
  0xd1   : > { %v352_v5 = vadd.f32 %v811_v42, %v351_v3  ;;  %v400_v19 = vmax.f32 %v379_v17, 0.0 }
  0xd3   : > { %v391_v6 = vmax.f32 %v352_v5, 0.0  ;;  %486 = vmatmul.f32.vlgmr.msrb.gmra.mxu3 %v400_v19 }
  0xd5   : > { %459 = vmatmul.f32.gmra.mxu1 %v391_v6 }
  0xd6   : > { %v381_v21 = vpop.f32.mrf.mxu3 }
  0xd7   : > { %v382_v22 = vadd.f32 %v811_v42, %v381_v21 }
  0xd8   : > { %v354_v7 = vpop.f32.mrf.mxu0 }
  0xd9   : > { %v355_v9 = vadd.f32 %v811_v42, %v354_v7  ;;  %v401_v24 = vmax.f32 %v382_v22, 0.0 }
  0xdb   : > { %v392_v10 = vmax.f32 %v355_v9, 0.0  ;;  %489 = vmatmul.f32.gmra.mxu3 %v401_v24 }
  0xdd   : > { %462 = vmatmul.f32.vlgmr.msra.gmra.mxu2 %v392_v10 }
  0xe0   : > { %v357_v11 = vpop.f32.mrf.mxu0 }
  0xe1   : > { %v358_v13 = vadd.f32 %v811_v42, %v357_v11 }
  0xe3   : > { %v393_v14 = vmax.f32 %v358_v13, 0.0 }
  0xe5   : > { %465 = vmatmul.f32.gmra.mxu2 %v393_v14 }
  0xed   : > { %468 = vmatmul.f32.gmra.mxu2 %v394_v18 }
  0xf5   : > { %471 = vmatmul.f32.gmra.mxu2 %v395_v23 }
  0xfd   : > { %474 = vmatmul.f32.gmra.mxu2 %v396_v26 }
 0x105   : > { %477 = vmatmul.f32.gmra.mxu2 %v397_v28 }
 0x10d   : > { %480 = vmatmul.f32.gmra.mxu2 %v398_v30 }
 0x115   : > { %483 = vmatmul.f32.gmra.mxu2 %v399_v32 }
 0x11a   : > { %v439_v34 = vpop.f32.mrf.mxu1 }
 0x11b   : > { %v440_v35 = vadd.f32 %v643_v33, %v439_v34 }
 0x11d   : > { %493 = vst.msk [vmem:[%s839_s10] sm:$0xff] %vm258_vm0, %v440_v35 }
 0x122   : > { %v442_v36 = vpop.f32.mrf.mxu1 }
 0x123   : > { %v443_v37 = vadd.f32 %v643_v33, %v442_v36 }
 0x125   : > { %494 = vst.msk [vmem:[%s839_s10 + $0x8] sm:$0xff] %vm258_vm0, %v443_v37 }
 0x12a   : > { %v445_v38 = vpop.f32.mrf.mxu1 }
 0x12b   : > { %v446_v39 = vadd.f32 %v643_v33, %v445_v38 }
 0x12d   : > { %495 = vst.msk [vmem:[%s839_s10 + $0x10] sm:$0xff] %vm258_vm0, %v446_v39 }
 0x132   : > { %v448_v40 = vpop.f32.mrf.mxu1 }
 0x133   : > { %v449_v41 = vadd.f32 %v643_v33, %v448_v40 }
 0x135   : > { %496 = vst.msk [vmem:[%s839_s10 + $0x18] sm:$0xff] %vm258_vm0, %v449_v41 }
 0x13a   : > { %v451_v42 = vpop.f32.mrf.mxu1 }
 0x13b   : > { %v452_v43 = vadd.f32 %v643_v33, %v451_v42 }
 0x13d   : > { %497 = vst.msk [vmem:[%s839_s10 + $0x20] sm:$0xff] %vm258_vm0, %v452_v43 }
 0x142   : > { %v454_v44 = vpop.f32.mrf.mxu1 }
 0x143   : > { %v455_v45 = vadd.f32 %v643_v33, %v454_v44 }
 0x145   : > { %498 = vst.msk [vmem:[%s839_s10 + $0x28] sm:$0xff] %vm258_vm0, %v455_v45 }
 0x14a   : > { %v457_v46 = vpop.f32.mrf.mxu1 }
 0x14b   : > { %v458_v47 = vadd.f32 %v643_v33, %v457_v46 }
 0x14d   : > { %499 = vst.msk [vmem:[%s839_s10 + $0x30] sm:$0xff] %vm258_vm0, %v458_v47 }
 0x152   : > { %v460_v48 = vpop.f32.mrf.mxu1 }
 0x153   : > { %v461_v49 = vadd.f32 %v643_v33, %v460_v48 }
 0x155   : > { %500 = vst.msk [vmem:[%s839_s10 + $0x38] sm:$0xff] %vm258_vm0, %v461_v49 }
 0x156   : > { %v487_v55 = vpop.f32.mrf.mxu3 }
 0x157   : > { %v488_v57 = vadd.f32 %v643_v33, %v487_v55 }
 0x159   : > { %509 = vst.msk [vmem:[%s839_s10 + $0x80] sm:$0xff] %vm258_vm0, %v488_v57 }
 0x15e   : > { %v490_v59 = vpop.f32.mrf.mxu3 }
 0x15f   : > { %v491_v61 = vadd.f32 %v643_v33, %v490_v59 }
 0x160   : > { %v463_v50 = vpop.f32.mrf.mxu2 }
 0x161   : > { %v464_v51 = vadd.f32 %v643_v33, %v463_v50  ;;  %510 = vst.msk [vmem:[%s839_s10 + $0x88] sm:$0xff] %vm258_vm0, %v491_v61 }
 0x163   : > { %501 = vst.msk [vmem:[%s839_s10 + $0x40] sm:$0xff] %vm258_vm0, %v464_v51 }
 0x168   : > { %v466_v52 = vpop.f32.mrf.mxu2 }
 0x169   : > { %v467_v53 = vadd.f32 %v643_v33, %v466_v52 }
 0x16b   : > { %502 = vst.msk [vmem:[%s839_s10 + $0x48] sm:$0xff] %vm258_vm0, %v467_v53 }
 0x170   : > { %v469_v54 = vpop.f32.mrf.mxu2 }
 0x171   : > { %v470_v56 = vadd.f32 %v643_v33, %v469_v54 }
 0x173   : > { %503 = vst.msk [vmem:[%s839_s10 + $0x50] sm:$0xff] %vm258_vm0, %v470_v56 }
 0x178   : > { %v472_v58 = vpop.f32.mrf.mxu2 }
 0x179   : > { %v473_v60 = vadd.f32 %v643_v33, %v472_v58 }
 0x17b   : > { %504 = vst.msk [vmem:[%s839_s10 + $0x58] sm:$0xff] %vm258_vm0, %v473_v60 }
 0x180   : > { %v475_v62 = vpop.f32.mrf.mxu2 }
 0x181   : > { %v476_v63 = vadd.f32 %v643_v33, %v475_v62 }
 0x183   : > { %505 = vst.msk [vmem:[%s839_s10 + $0x60] sm:$0xff] %vm258_vm0, %v476_v63 }
 0x188   : > { %v478_v0 = vpop.f32.mrf.mxu2 }
 0x189   : > { %v479_v1 = vadd.f32 %v643_v33, %v478_v0 }
 0x18b   : > { %506 = vst.msk [vmem:[%s839_s10 + $0x68] sm:$0xff] %vm258_vm0, %v479_v1 }
 0x190   : > { %v481_v2 = vpop.f32.mrf.mxu2 }
 0x191   : > { %v482_v3 = vadd.f32 %v643_v33, %v481_v2 }
 0x193   : > { %507 = vst.msk [vmem:[%s839_s10 + $0x70] sm:$0xff] %vm258_vm0, %v482_v3 }
 0x198   : > { %v484_v4 = vpop.f32.mrf.mxu2 }
 0x199   : > { %v485_v5 = vadd.f32 %v643_v33, %v484_v4 }
 0x19b   : > { %508 = vst.msk [vmem:[%s839_s10 + $0x78] sm:$0xff] %vm258_vm0, %v485_v5 }
 0x19c PF: > { %s15_s18 = sadd.s32 1, %s650_s18  }
 0x19d   : > { %p12_p4 = scmp.ge.s32.totalorder %s15_s18, 4  }
 0x19f   :  { %14 = sbr.rel (!%p12_p4) target bundleno = 1 (0x1), region = 70 }

// kernel: reverse.6
= control target key start
LH: loop header
LB: loop body
LE: loop exit
PB: predicated region body
PF: predicated region fallthrough
CT: control target
= control target key end

     0   :  { %s344_s0 = inlined_call_operand.vmem [shape: f32[2,32,16,7], index: 0, kind: input, shape index: {}]   ;;  %s345_s1 = inlined_call_operand.vmem [shape: f32[2,32,16,7], index: 1, kind: output, shape index: {}]  }
   0x1   :  { %v112_v0 = vld [vmem:[%s344_s0 + $0x60] sm:$0xff]  ;;  %v113_v1 = vld [vmem:[%s344_s0 + $0xd0] sm:$0xff]  ;;  %v138_v14 = vld [vmem:[%s344_s0 + $0x68] sm:$0xff] }
   0x2   :  { %v115_v2 = vld [vmem:[%s344_s0 + $0x50] sm:$0xff]  ;;  %4 = vst [vmem:[%s345_s1] sm:$0xff] %v112_v0  ;;  %v117_v3 = vld [vmem:[%s344_s0 + $0xc0] sm:$0xff]  ;;  %v140_v15 = vld [vmem:[%s344_s0 + $0xd8] sm:$0xff] }
   0x3   :  { %114 = vst [vmem:[%s345_s1 + $0x70] sm:$0xff] %v113_v1  ;;  %v119_v4 = vld [vmem:[%s344_s0 + $0x40] sm:$0xff]  ;;  %v121_v5 = vld [vmem:[%s344_s0 + $0xb0] sm:$0xff]  ;;  %v142_v16 = vld [vmem:[%s344_s0 + $0x58] sm:$0xff] }
   0x4   :  { %116 = vst [vmem:[%s345_s1 + $0x10] sm:$0xff] %v115_v2  ;;  %v123_v6 = vld [vmem:[%s344_s0 + $0x30] sm:$0xff]  ;;  %v125_v7 = vld [vmem:[%s344_s0 + $0xa0] sm:$0xff]  ;;  %v144_v17 = vld [vmem:[%s344_s0 + $0xc8] sm:$0xff] }
   0x5   :  { %118 = vst [vmem:[%s345_s1 + $0x80] sm:$0xff] %v117_v3  ;;  %v127_v8 = vld [vmem:[%s344_s0 + $0x20] sm:$0xff]  ;;  %v129_v9 = vld [vmem:[%s344_s0 + $0x90] sm:$0xff]  ;;  %v146_v18 = vld [vmem:[%s344_s0 + $0x48] sm:$0xff] }
   0x6   :  { %120 = vst [vmem:[%s345_s1 + $0x20] sm:$0xff] %v119_v4  ;;  %v131_v10 = vld [vmem:[%s344_s0 + $0x10] sm:$0xff]  ;;  %v133_v11 = vld [vmem:[%s344_s0 + $0x80] sm:$0xff]  ;;  %v148_v19 = vld [vmem:[%s344_s0 + $0xb8] sm:$0xff] }
   0x7   :  { %122 = vst [vmem:[%s345_s1 + $0x90] sm:$0xff] %v121_v5  ;;  %v49_v12 = vld [vmem:[%s344_s0] sm:$0xff]  ;;  %v136_v13 = vld [vmem:[%s344_s0 + $0x70] sm:$0xff]  ;;  %v150_v20 = vld [vmem:[%s344_s0 + $0x38] sm:$0xff] }
   0x8   :  { %124 = vst [vmem:[%s345_s1 + $0x30] sm:$0xff] %v123_v6  ;;  %v152_v21 = vld [vmem:[%s344_s0 + $0xa8] sm:$0xff]  ;;  %v156_v23 = vld [vmem:[%s344_s0 + $0x98] sm:$0xff] }
   0x9   :  { %126 = vst [vmem:[%s345_s1 + $0xa0] sm:$0xff] %v125_v7  ;;  %v154_v22 = vld [vmem:[%s344_s0 + $0x28] sm:$0xff]  ;;  %v158_v24 = vld [vmem:[%s344_s0 + $0x18] sm:$0xff] }
   0xa   :  { %128 = vst [vmem:[%s345_s1 + $0x40] sm:$0xff] %v127_v8  ;;  %v160_v25 = vld [vmem:[%s344_s0 + $0x88] sm:$0xff]  ;;  %v164_v27 = vld [vmem:[%s344_s0 + $0x78] sm:$0xff] }
   0xb   :  { %130 = vst [vmem:[%s345_s1 + $0xb0] sm:$0xff] %v129_v9  ;;  %v162_v26 = vld [vmem:[%s344_s0 + $0x8] sm:$0xff] }
   0xc   :  { %132 = vst [vmem:[%s345_s1 + $0x50] sm:$0xff] %v131_v10 }
   0xd   :  { %134 = vst [vmem:[%s345_s1 + $0xc0] sm:$0xff] %v133_v11 }
   0xe   :  { %135 = vst [vmem:[%s345_s1 + $0x60] sm:$0xff] %v49_v12 }
   0xf   :  { %137 = vst [vmem:[%s345_s1 + $0xd0] sm:$0xff] %v136_v13 }
  0x10   :  { %139 = vst [vmem:[%s345_s1 + $0x8] sm:$0xff] %v138_v14 }
  0x11   :  { %141 = vst [vmem:[%s345_s1 + $0x78] sm:$0xff] %v140_v15 }
  0x12   :  { %143 = vst [vmem:[%s345_s1 + $0x18] sm:$0xff] %v142_v16 }
  0x13   :  { %145 = vst [vmem:[%s345_s1 + $0x88] sm:$0xff] %v144_v17 }
  0x14   :  { %147 = vst [vmem:[%s345_s1 + $0x28] sm:$0xff] %v146_v18 }
  0x15   :  { %149 = vst [vmem:[%s345_s1 + $0x98] sm:$0xff] %v148_v19 }
  0x16   :  { %151 = vst [vmem:[%s345_s1 + $0x38] sm:$0xff] %v150_v20 }
  0x17   :  { %153 = vst [vmem:[%s345_s1 + $0xa8] sm:$0xff] %v152_v21 }
  0x18   :  { %155 = vst [vmem:[%s345_s1 + $0x48] sm:$0xff] %v154_v22 }
  0x19   :  { %157 = vst [vmem:[%s345_s1 + $0xb8] sm:$0xff] %v156_v23 }
  0x1a   :  { %159 = vst [vmem:[%s345_s1 + $0x58] sm:$0xff] %v158_v24 }
  0x1b   :  { %161 = vst [vmem:[%s345_s1 + $0xc8] sm:$0xff] %v160_v25 }
  0x1c   :  { %163 = vst [vmem:[%s345_s1 + $0x68] sm:$0xff] %v162_v26 }
  0x1d   :  { %165 = vst [vmem:[%s345_s1 + $0xd8] sm:$0xff] %v164_v27 }

// kernel: df_no_forward.7
= control target key start
LH: loop header
LB: loop body
LE: loop exit
PB: predicated region body
PF: predicated region fallthrough
CT: control target
= control target key end

     0   :  { %s254_s0 = inlined_call_operand.vmem [shape: f32[128,128], index: 0, kind: input, shape index: {}]   ;;  %s255_s1 = inlined_call_operand.vmem [shape: f32[128,128], index: 1, kind: input, shape index: {}]   ;;  %s256_s2 = inlined_call_operand.vmem [shape: f32[128,128], index: 2, kind: output, shape index: {}]  }
   0x1   :  { %v11_v0 = vld [vmem:[%s254_s0] sm:$0xff]  ;;  %v12_v2 = vld [vmem:[%s254_s0 + $0x8] sm:$0xff]  ;;  %v13_v5 = vld [vmem:[%s254_s0 + $0x10] sm:$0xff] }
   0x2   :  { %v27_v1 = vld [vmem:[%s255_s1] sm:$0xff]  ;;  %v28_v4 = vld [vmem:[%s255_s1 + $0x8] sm:$0xff]  ;;  %v29_v6 = vld [vmem:[%s255_s1 + $0x10] sm:$0xff] }
   0x3   :  { %v43_v3 = vadd.f32 %v27_v1, %v11_v0  ;;  %v44_v7 = vadd.f32 %v28_v4, %v12_v2  ;;  %v45_v8 = vadd.f32 %v29_v6, %v13_v5  ;;  %v14_v9 = vld [vmem:[%s254_s0 + $0x18] sm:$0xff]  ;;  %v15_v11 = vld [vmem:[%s254_s0 + $0x20] sm:$0xff]  ;;  %v16_v15 = vld [vmem:[%s254_s0 + $0x28] sm:$0xff] }
   0x4   :  { %v30_v10 = vld [vmem:[%s255_s1 + $0x18] sm:$0xff]  ;;  %v31_v14 = vld [vmem:[%s255_s1 + $0x20] sm:$0xff]  ;;  %v32_v16 = vld [vmem:[%s255_s1 + $0x28] sm:$0xff] }
   0x5   :  { %v59_v12 = vmax.f32 %v43_v3, 0.0  ;;  %v46_v13 = vadd.f32 %v30_v10, %v14_v9  ;;  %v60_v17 = vmax.f32 %v44_v7, 0.0  ;;  %v61_v18 = vmax.f32 %v45_v8, 0.0  ;;  %v17_v21 = vld [vmem:[%s254_s0 + $0x30] sm:$0xff]  ;;  %v18_v23 = vld [vmem:[%s254_s0 + $0x38] sm:$0xff]  ;;  %v19_v27 = vld [vmem:[%s254_s0 + $0x40] sm:$0xff] }
   0x6   :  { %v47_v19 = vadd.f32 %v31_v14, %v15_v11  ;;  %v48_v20 = vadd.f32 %v32_v16, %v16_v15  ;;  %v33_v22 = vld [vmem:[%s255_s1 + $0x30] sm:$0xff]  ;;  %v34_v26 = vld [vmem:[%s255_s1 + $0x38] sm:$0xff]  ;;  %v35_v28 = vld [vmem:[%s255_s1 + $0x40] sm:$0xff] }
   0x7   :  { %75 = vst [vmem:[%s256_s2] sm:$0xff] %v59_v12  ;;  %v62_v24 = vmax.f32 %v46_v13, 0.0  ;;  %v49_v25 = vadd.f32 %v33_v22, %v17_v21  ;;  %v50_v31 = vadd.f32 %v34_v26, %v18_v23  ;;  %v51_v32 = vadd.f32 %v35_v28, %v19_v27  ;;  %v20_v33 = vld [vmem:[%s254_s0 + $0x48] sm:$0xff]  ;;  %v21_v35 = vld [vmem:[%s254_s0 + $0x50] sm:$0xff]  ;;  %v22_v39 = vld [vmem:[%s254_s0 + $0x58] sm:$0xff] }
   0x8   :  { %76 = vst [vmem:[%s256_s2 + $0x8] sm:$0xff] %v60_v17  ;;  %v63_v29 = vmax.f32 %v47_v19, 0.0  ;;  %v64_v30 = vmax.f32 %v48_v20, 0.0  ;;  %v36_v34 = vld [vmem:[%s255_s1 + $0x48] sm:$0xff]  ;;  %v37_v38 = vld [vmem:[%s255_s1 + $0x50] sm:$0xff]  ;;  %v38_v40 = vld [vmem:[%s255_s1 + $0x58] sm:$0xff] }
   0x9   :  { %77 = vst [vmem:[%s256_s2 + $0x10] sm:$0xff] %v61_v18  ;;  %v65_v36 = vmax.f32 %v49_v25, 0.0  ;;  %v52_v37 = vadd.f32 %v36_v34, %v20_v33  ;;  %v66_v41 = vmax.f32 %v50_v31, 0.0  ;;  %v53_v42 = vadd.f32 %v37_v38, %v21_v35  ;;  %v23_v44 = vld [vmem:[%s254_s0 + $0x60] sm:$0xff]  ;;  %v24_v46 = vld [vmem:[%s254_s0 + $0x68] sm:$0xff]  ;;  %v25_v50 = vld [vmem:[%s254_s0 + $0x70] sm:$0xff] }
   0xa   :  { %78 = vst [vmem:[%s256_s2 + $0x18] sm:$0xff] %v62_v24  ;;  %v54_v43 = vadd.f32 %v38_v40, %v22_v39  ;;  %v39_v45 = vld [vmem:[%s255_s1 + $0x60] sm:$0xff]  ;;  %v67_v47 = vmax.f32 %v51_v32, 0.0  ;;  %v40_v49 = vld [vmem:[%s255_s1 + $0x68] sm:$0xff]  ;;  %v41_v51 = vld [vmem:[%s255_s1 + $0x70] sm:$0xff] }
   0xb   :  { %79 = vst [vmem:[%s256_s2 + $0x20] sm:$0xff] %v63_v29  ;;  %v55_v48 = vadd.f32 %v39_v45, %v23_v44  ;;  %v68_v52 = vmax.f32 %v52_v37, 0.0  ;;  %v56_v53 = vadd.f32 %v40_v49, %v24_v46  ;;  %v26_v54 = vld [vmem:[%s254_s0 + $0x78] sm:$0xff]  ;;  %v69_v56 = vmax.f32 %v53_v42, 0.0 }
   0xc   :  { %80 = vst [vmem:[%s256_s2 + $0x28] sm:$0xff] %v64_v30  ;;  %v42_v55 = vld [vmem:[%s255_s1 + $0x78] sm:$0xff]  ;;  %v57_v57 = vadd.f32 %v41_v51, %v25_v50  ;;  %v70_v58 = vmax.f32 %v54_v43, 0.0 }
   0xd   :  { %81 = vst [vmem:[%s256_s2 + $0x30] sm:$0xff] %v65_v36  ;;  %v58_v59 = vadd.f32 %v42_v55, %v26_v54  ;;  %v71_v60 = vmax.f32 %v55_v48, 0.0  ;;  %v72_v61 = vmax.f32 %v56_v53, 0.0 }
   0xe   :  { %82 = vst [vmem:[%s256_s2 + $0x38] sm:$0xff] %v66_v41  ;;  %v73_v62 = vmax.f32 %v57_v57, 0.0 }
   0xf   :  { %83 = vst [vmem:[%s256_s2 + $0x40] sm:$0xff] %v67_v47  ;;  %v74_v63 = vmax.f32 %v58_v59, 0.0 }
  0x10   :  { %84 = vst [vmem:[%s256_s2 + $0x48] sm:$0xff] %v68_v52 }
  0x11   :  { %85 = vst [vmem:[%s256_s2 + $0x50] sm:$0xff] %v69_v56 }
  0x12   :  { %86 = vst [vmem:[%s256_s2 + $0x58] sm:$0xff] %v70_v58 }
  0x13   :  { %87 = vst [vmem:[%s256_s2 + $0x60] sm:$0xff] %v71_v60 }
  0x14   :  { %88 = vst [vmem:[%s256_s2 + $0x68] sm:$0xff] %v72_v61 }
  0x15   :  { %89 = vst [vmem:[%s256_s2 + $0x70] sm:$0xff] %v73_v62 }
  0x16   :  { %90 = vst [vmem:[%s256_s2 + $0x78] sm:$0xff] %v74_v63 }

// kernel: df_no_forward.11
= control target key start
LH: loop header
LB: loop body
LE: loop exit
PB: predicated region body
PF: predicated region fallthrough
CT: control target
= control target key end

     0   :  { %s238_s0 = inlined_call_operand.vmem [shape: f32[128,128], index: 0, kind: input, shape index: {}]   ;;  %s239_s1 = inlined_call_operand.vmem [shape: f32[128,128], index: 1, kind: input, shape index: {}]   ;;  %s240_s2 = inlined_call_operand.vmem [shape: f32[128,128], index: 2, kind: output, shape index: {}]  }
   0x1   :  { %v11_v0 = vld [vmem:[%s238_s0] sm:$0xff]  ;;  %v12_v2 = vld [vmem:[%s238_s0 + $0x8] sm:$0xff]  ;;  %v13_v5 = vld [vmem:[%s238_s0 + $0x10] sm:$0xff] }
   0x2   :  { %v27_v1 = vld [vmem:[%s239_s1] sm:$0xff]  ;;  %v28_v4 = vld [vmem:[%s239_s1 + $0x8] sm:$0xff]  ;;  %v29_v6 = vld [vmem:[%s239_s1 + $0x10] sm:$0xff] }
   0x3   :  { %v43_v3 = vadd.f32 %v27_v1, %v11_v0  ;;  %v44_v7 = vadd.f32 %v28_v4, %v12_v2  ;;  %v45_v8 = vadd.f32 %v29_v6, %v13_v5  ;;  %v14_v9 = vld [vmem:[%s238_s0 + $0x18] sm:$0xff]  ;;  %v15_v11 = vld [vmem:[%s238_s0 + $0x20] sm:$0xff]  ;;  %v16_v14 = vld [vmem:[%s238_s0 + $0x28] sm:$0xff] }
   0x4   :  { %v30_v10 = vld [vmem:[%s239_s1 + $0x18] sm:$0xff]  ;;  %v31_v13 = vld [vmem:[%s239_s1 + $0x20] sm:$0xff]  ;;  %v32_v15 = vld [vmem:[%s239_s1 + $0x28] sm:$0xff] }
   0x5   :  { %59 = vst [vmem:[%s240_s2] sm:$0xff] %v43_v3  ;;  %v46_v12 = vadd.f32 %v30_v10, %v14_v9  ;;  %v47_v16 = vadd.f32 %v31_v13, %v15_v11  ;;  %v48_v17 = vadd.f32 %v32_v15, %v16_v14  ;;  %v17_v18 = vld [vmem:[%s238_s0 + $0x30] sm:$0xff]  ;;  %v18_v20 = vld [vmem:[%s238_s0 + $0x38] sm:$0xff]  ;;  %v19_v23 = vld [vmem:[%s238_s0 + $0x40] sm:$0xff] }
   0x6   :  { %60 = vst [vmem:[%s240_s2 + $0x8] sm:$0xff] %v44_v7  ;;  %v33_v19 = vld [vmem:[%s239_s1 + $0x30] sm:$0xff]  ;;  %v34_v22 = vld [vmem:[%s239_s1 + $0x38] sm:$0xff]  ;;  %v35_v24 = vld [vmem:[%s239_s1 + $0x40] sm:$0xff] }
   0x7   :  { %61 = vst [vmem:[%s240_s2 + $0x10] sm:$0xff] %v45_v8  ;;  %v49_v21 = vadd.f32 %v33_v19, %v17_v18  ;;  %v50_v25 = vadd.f32 %v34_v22, %v18_v20  ;;  %v20_v26 = vld [vmem:[%s238_s0 + $0x48] sm:$0xff]  ;;  %v21_v28 = vld [vmem:[%s238_s0 + $0x50] sm:$0xff]  ;;  %v51_v29 = vadd.f32 %v35_v24, %v19_v23  ;;  %v22_v31 = vld [vmem:[%s238_s0 + $0x58] sm:$0xff] }
   0x8   :  { %62 = vst [vmem:[%s240_s2 + $0x18] sm:$0xff] %v46_v12  ;;  %v36_v27 = vld [vmem:[%s239_s1 + $0x48] sm:$0xff]  ;;  %v37_v30 = vld [vmem:[%s239_s1 + $0x50] sm:$0xff]  ;;  %v38_v32 = vld [vmem:[%s239_s1 + $0x58] sm:$0xff] }
   0x9   :  { %63 = vst [vmem:[%s240_s2 + $0x20] sm:$0xff] %v47_v16  ;;  %v52_v33 = vadd.f32 %v36_v27, %v20_v26  ;;  %v23_v34 = vld [vmem:[%s238_s0 + $0x60] sm:$0xff]  ;;  %v53_v36 = vadd.f32 %v37_v30, %v21_v28  ;;  %v24_v37 = vld [vmem:[%s238_s0 + $0x68] sm:$0xff]  ;;  %v54_v39 = vadd.f32 %v38_v32, %v22_v31  ;;  %v25_v40 = vld [vmem:[%s238_s0 + $0x70] sm:$0xff] }
   0xa   :  { %64 = vst [vmem:[%s240_s2 + $0x28] sm:$0xff] %v48_v17  ;;  %v39_v35 = vld [vmem:[%s239_s1 + $0x60] sm:$0xff]  ;;  %v40_v38 = vld [vmem:[%s239_s1 + $0x68] sm:$0xff]  ;;  %v41_v41 = vld [vmem:[%s239_s1 + $0x70] sm:$0xff] }
   0xb   :  { %65 = vst [vmem:[%s240_s2 + $0x30] sm:$0xff] %v49_v21  ;;  %v55_v42 = vadd.f32 %v39_v35, %v23_v34  ;;  %v26_v43 = vld [vmem:[%s238_s0 + $0x78] sm:$0xff]  ;;  %v56_v45 = vadd.f32 %v40_v38, %v24_v37  ;;  %v57_v46 = vadd.f32 %v41_v41, %v25_v40 }
   0xc   :  { %66 = vst [vmem:[%s240_s2 + $0x38] sm:$0xff] %v50_v25  ;;  %v42_v44 = vld [vmem:[%s239_s1 + $0x78] sm:$0xff] }
   0xd   :  { %67 = vst [vmem:[%s240_s2 + $0x40] sm:$0xff] %v51_v29  ;;  %v58_v47 = vadd.f32 %v42_v44, %v26_v43 }
   0xe   :  { %68 = vst [vmem:[%s240_s2 + $0x48] sm:$0xff] %v52_v33 }
   0xf   :  { %69 = vst [vmem:[%s240_s2 + $0x50] sm:$0xff] %v53_v36 }
  0x10   :  { %70 = vst [vmem:[%s240_s2 + $0x58] sm:$0xff] %v54_v39 }
  0x11   :  { %71 = vst [vmem:[%s240_s2 + $0x60] sm:$0xff] %v55_v42 }
  0x12   :  { %72 = vst [vmem:[%s240_s2 + $0x68] sm:$0xff] %v56_v45 }
  0x13   :  { %73 = vst [vmem:[%s240_s2 + $0x70] sm:$0xff] %v57_v46 }
  0x14   :  { %74 = vst [vmem:[%s240_s2 + $0x78] sm:$0xff] %v58_v47 }

</bundles_post_ra>
